<compile_context>
chip_gen: v7x
topology: tpu7x:2x2x1
jax: 0.10.0
libtpu: 0.0.40
codegen_flags: <defaults>
</compile_context>

<pallas_src>
import math
import functools

import jax
import jax.numpy as jnp
from jax.experimental import pallas as pl
from jax.experimental.pallas import tpu as pltpu


def _attn_kernel(x_ref, w_ref, b_ref, out_ref, q_scr, kt_scr, v_scr, *,
                 num_heads, head_dim, scale, tile_q, exact_softmax):
    """One grid step = (batch element b, query tile qi).

    x_ref  : (1, S, H)   full sequence of batch b (resident across qi)
    w_ref  : (H, 3H)     packed [Wq | Wk | Wv]  (y = x @ W + b layout), grid-constant
    b_ref  : (1, 3H)     packed [bq | bk | bv]  (f32), grid-constant
    out_ref: (1, Tq, H)  lane-dense context slab
    q_scr  : (S, H)      cached scaled Q  (compute dtype)  -- carries across qi
    kt_scr : (H, S)      cached K^T                         -- carries across qi
    v_scr  : (S, H)      cached V                           -- carries across qi
    """
    H = num_heads * head_dim
    qi = pl.program_id(1)

    # ---- Fused QKV projection: once per batch element (first query tile). ----
    @pl.when(qi == 0)
    def _project():
        xb = x_ref[0]                                                   # (S, H)
        qkv = jnp.dot(xb, w_ref[...], preferred_element_type=jnp.float32)
        qkv = qkv + b_ref[...]                                          # (S, 3H) f32
        # Fold 1/sqrt(Dh) into Q: O(S*H) instead of scaling every score.
        q_scr[...] = (qkv[:, :H] * scale).astype(q_scr.dtype)
        # One (S,H)->(H,S) transpose per batch so per-tile score matmuls need
        # no relayout at all.
        kt_scr[...] = qkv[:, H:2 * H].T.astype(kt_scr.dtype)
        v_scr[...] = qkv[:, 2 * H:].astype(v_scr.dtype)

    # ---- Attention for this query tile, statically unrolled over heads. -----
    row0 = pl.multiple_of(qi * tile_q, tile_q)
    q_rows = q_scr[pl.ds(row0, tile_q), :]                              # (Tq, H)

    ctx_parts = []
    for h in range(num_heads):
        lo = h * head_dim
        hi = lo + head_dim
        q_h = q_rows[:, lo:hi]                                          # (Tq, Dh)
        k_t = kt_scr[lo:hi, :]                                          # (Dh, S)
        v_h = v_scr[:, lo:hi]                                           # (S, Dh)

        s = jnp.dot(q_h, k_t, preferred_element_type=jnp.float32)       # (Tq, S)
        # Numerically-stable softmax in f32.
        s = s - jnp.max(s, axis=-1, keepdims=True)
        e = jnp.exp(s)
        denom = jnp.sum(e, axis=-1, keepdims=True)
        if exact_softmax:
            p = e / denom
        else:
            p = e * pl.reciprocal(denom, approx=True)    # EUP, ~1e-3 rel err
        # TODO(synk): training-mode attention-probs dropout and head_mask are
        # not implemented (eval-mode identity only).
        ctx_parts.append(jnp.dot(p.astype(v_h.dtype), v_h,
                                 preferred_element_type=jnp.float32))   # (Tq, Dh)

    # Lane-dense (Tq, H) slab, single full-width store (matches the PyTorch
    # permute(0,2,1,3).view(..., all_head_size)).
    out_ref[0] = jnp.concatenate(ctx_parts, axis=-1).astype(out_ref.dtype)


def _pick_tile_q(S, H, mm_bytes, out_bytes, budget_bytes):
    """Largest query tile (divisor of S, sublane-aligned) whose estimated VMEM
    working set fits the budget."""
    align = 16 if mm_bytes <= 2 else 8

    def estimate(t):
        tiled = t < S
        fixed = (1 if tiled else 2) * S * H * mm_bytes    # resident x slab
        fixed += 3 * H * H * mm_bytes + 4 * 3 * H         # single-buffered W + bias
        fixed += 3 * S * H * mm_bytes                     # Q / K^T / V scratch
        fixed += 16 * S * H                               # f32 projection temporaries
        per = 2 * t * H * out_bytes                       # double-buffered out slab
        per += 4 * t * S * 4                              # score/exp/prob f32 (per head)
        per += 2 * t * H * 4                              # ctx pieces + concat
        return fixed + per

    if estimate(S) <= budget_bytes:
        return S
    cands = [t for t in range(S - 1, 0, -1) if S % t == 0 and t % align == 0]
    for t in cands:
        if estimate(t) <= budget_bytes:
            return t
    return cands[-1] if cands else S


def gext_self_attention(hidden_states, wq, wk, wv, bq, bk, bv,
                        num_heads, head_dim, *, tile_q=None,
                        compute_dtype=None, exact_softmax=False,
                        vmem_budget_bytes=32 * 1024 * 1024,
                        vmem_limit_bytes=48 * 1024 * 1024):
    """hidden_states: (B, S, H).
    wq/wk/wv: (H, H) in y = x @ w + b layout (i.e. PyTorch nn.Linear weight.T).
    bq/bk/bv: (H,).
    tile_q: query-tile length (None = auto from VMEM budget; must divide S).
    compute_dtype: e.g. jnp.bfloat16 for bf16 matmul operands, f32 accum/softmax.
    Returns context_layer: (B, S, H).
    """
    B, S, H = hidden_states.shape
    assert H == num_heads * head_dim
    out_dtype = hidden_states.dtype

    mm_dtype = jnp.dtype(compute_dtype) if compute_dtype is not None \
        else jnp.dtype(hidden_states.dtype)
    mm_bytes = mm_dtype.itemsize
    out_bytes = jnp.dtype(out_dtype).itemsize
    align = 16 if mm_bytes <= 2 else 8

    if tile_q is None:
        tile_q = _pick_tile_q(S, H, mm_bytes, out_bytes, vmem_budget_bytes)
    if tile_q >= S:
        tile_q = S
    assert S % tile_q == 0, "tile_q must divide S"
    assert tile_q == S or tile_q % align == 0, \
        f"tile_q must be a multiple of {align} for compute dtype {mm_dtype}"
    query_tiled = tile_q < S
    n_q = S // tile_q

    # Pack weights/bias into single grid-constant operands (one DMA each);
    # (H, 3H) so the per-batch projection is one fused MXU pass.
    w_qkv = jnp.concatenate([wq, wk, wv], axis=1).astype(mm_dtype)          # (H, 3H)
    b_qkv = jnp.concatenate([bq, bk, bv], axis=0).reshape(1, 3 * H).astype(jnp.float32)

    x = hidden_states.astype(mm_dtype)
    scale = 1.0 / math.sqrt(head_dim)

    kernel = functools.partial(_attn_kernel, num_heads=num_heads,
                               head_dim=head_dim, scale=scale, tile_q=tile_q,
                               exact_softmax=exact_softmax)

    # Grid-constant operands: single-buffer (no point double-buffering a block
    # whose index never changes); frees VMEM for bigger query tiles.
    const_buf = pl.Buffered(1)
    w_spec = pl.BlockSpec((H, 3 * H), lambda b, qi: (0, 0), pipeline_mode=const_buf)
    b_spec = pl.BlockSpec((1, 3 * H), lambda b, qi: (0, 0), pipeline_mode=const_buf)
    if query_tiled:
        # x only changes with b (once per n_q steps) and is consumed only at
        # qi == 0 -> single buffer it as well.
        x_spec = pl.BlockSpec((1, S, H), lambda b, qi: (b, 0, 0),
                              pipeline_mode=pl.Buffered(1))
    else:
        x_spec = pl.BlockSpec((1, S, H), lambda b, qi: (b, 0, 0))
    o_spec = pl.BlockSpec((1, tile_q, H), lambda b, qi: (b, qi, 0))   # lane-dense

    return pl.pallas_call(
        kernel,
        out_shape=jax.ShapeDtypeStruct((B, S, H), out_dtype),
        grid_spec=pltpu.PrefetchScalarGridSpec(
            num_scalar_prefetch=0,
            grid=(B, n_q),
            in_specs=[x_spec, w_spec, b_spec],
            out_specs=o_spec,
            scratch_shapes=[pltpu.VMEM((S, H), mm_dtype),   # Q (pre-scaled)
                            pltpu.VMEM((H, S), mm_dtype),   # K^T
                            pltpu.VMEM((S, H), mm_dtype)],  # V
        ),
        compiler_params=pltpu.CompilerParams(
            # qi axis must be "arbitrary": the Q/K^T/V scratch carries across it.
            # TODO(synk): on v7x with B == 1 consider a separate projection
            # pallas_call so the query-tile axis can stay "parallel" (megacore).
            dimension_semantics=("parallel", "arbitrary"),
            vmem_limit_bytes=vmem_limit_bytes,
        ),
    )(x, w_qkv, b_qkv)


def _reference(hidden_states, wq, wk, wv, bq, bk, bv, num_heads, head_dim):
    B, S, H = hidden_states.shape

    def split_heads(t):  # (B, S, H) -> (B, nH, S, Dh)
        return jnp.transpose(t.reshape(B, S, num_heads, head_dim), (0, 2, 1, 3))

    q = split_heads(hidden_states @ wq + bq)
    k = split_heads(hidden_states @ wk + bk)
    v = split_heads(hidden_states @ wv + bv)
    scores = jnp.einsum("bhqd,bhkd->bhqk", q, k) / math.sqrt(head_dim)
    probs = jax.nn.softmax(scores, axis=-1)
    ctx = jnp.einsum("bhqk,bhkd->bhqd", probs, v)
    return jnp.transpose(ctx, (0, 2, 1, 3)).reshape(B, S, H)


if __name__ == "__main__":
    # Small config consistent with the module: hidden=32, heads=4, head_dim=8.
    B, S, H = 2, 16, 32
    num_heads, head_dim = 4, H // 4

    key = jax.random.PRNGKey(0)
    ks = jax.random.split(key, 7)
    hidden_states = jax.random.normal(ks[0], (B, S, H), dtype=jnp.float32)

    # nn.Linear weight is (out, in); we store W.T so y = x @ w + b.
    init = 0.02
    wq = init * jax.random.normal(ks[1], (H, H), dtype=jnp.float32)
    wk = init * jax.random.normal(ks[2], (H, H), dtype=jnp.float32)
    wv = init * jax.random.normal(ks[3], (H, H), dtype=jnp.float32)
    bq = 0.01 * jax.random.normal(ks[4], (H,), dtype=jnp.float32)
    bk = 0.01 * jax.random.normal(ks[5], (H,), dtype=jnp.float32)
    bv = 0.01 * jax.random.normal(ks[6], (H,), dtype=jnp.float32)

    ref = _reference(hidden_states, wq, wk, wv, bq, bk, bv, num_heads, head_dim)

    # 1) auto tile (tile_q == S here), f32 compute.
    out = gext_self_attention(hidden_states, wq, wk, wv, bq, bk, bv,
                              num_heads, head_dim)
    out = jax.block_until_ready(out)
    assert out.shape == (B, S, H)
    assert jnp.allclose(out, ref, atol=2e-3, rtol=2e-3), \
        f"f32 max err {jnp.max(jnp.abs(out - ref))}"

    # 2) query-tiled path (grid = (B, 2)): exercises the cached-K/V carry
    #    across the 'arbitrary' query-tile axis.
    out_t = gext_self_attention(hidden_states, wq, wk, wv, bq, bk, bv,
                                num_heads, head_dim, tile_q=8)
    out_t = jax.block_until_ready(out_t)
    assert jnp.allclose(out_t, ref, atol=2e-3, rtol=2e-3), \
        f"tiled max err {jnp.max(jnp.abs(out_t - ref))}"

    # 3) bf16 matmul operands with f32 accumulation (v6e/v7x MXU recipe).
    out_bf = gext_self_attention(hidden_states, wq, wk, wv, bq, bk, bv,
                                 num_heads, head_dim, compute_dtype=jnp.bfloat16)
    out_bf = jax.block_until_ready(out_bf)
    assert jnp.allclose(out_bf, ref, atol=3e-2, rtol=3e-2), \
        f"bf16 max err {jnp.max(jnp.abs(out_bf - ref))}"

    print("KERNEL_OK")
</pallas_src>

<mosaic_0001>
module attributes {stable_mosaic.version = 11 : i64} {
  func.func @_attn_kernel(%arg0: i32, %arg1: i32, %arg2: memref<1x16x32xf32, #tpu.memory_space<vmem>>, %arg3: memref<32x96xf32, #tpu.memory_space<vmem>>, %arg4: memref<1x96xf32, #tpu.memory_space<vmem>>, %arg5: memref<1x16x32xf32, #tpu.memory_space<vmem>>, %arg6: memref<16x32xf32, #tpu.memory_space<vmem>>, %arg7: memref<32x16xf32, #tpu.memory_space<vmem>>, %arg8: memref<16x32xf32, #tpu.memory_space<vmem>>) attributes {dimension_semantics = [#tpu.dimension_semantics<parallel>, #tpu.dimension_semantics<arbitrary>], iteration_bounds = array<i64: 2, 1>, scalar_prefetch = 0 : i64, scratch_operands = 3 : i64, tpu.core_type = #tpu.core_type<tc>, window_params = [{transform_indices = @transform_0, window_bounds = array<i64: 1, 16, 32>}, {pipeline_mode = #tpu.pipeline_mode<synchronous>, transform_indices = @transform_1, window_bounds = array<i64: 32, 96>}, {pipeline_mode = #tpu.pipeline_mode<synchronous>, transform_indices = @transform_2, window_bounds = array<i64: 1, 96>}, {transform_indices = @transform_3, window_bounds = array<i64: 1, 16, 32>}]} {
    %c0_i32 = arith.constant 0 : i32
    %0 = arith.cmpi eq, %arg1, %c0_i32 : i32
    %1 = arith.extui %0 : i1 to i32
    %c0_i32_0 = arith.constant 0 : i32
    %2 = arith.cmpi ne, %1, %c0_i32_0 : i32
    scf.if %2 {
      %c0_32 = arith.constant 0 : index
      %c0_33 = arith.constant 0 : index
      %c0_34 = arith.constant 0 : index
      %71 = vector.load %arg2[%c0_32, %c0_33, %c0_34] : memref<1x16x32xf32, #tpu.memory_space<vmem>>, vector<1x16x32xf32>
      %72 = vector.shape_cast %71 : vector<1x16x32xf32> to vector<16x32xf32>
      %c0_35 = arith.constant 0 : index
      %c0_36 = arith.constant 0 : index
      %73 = vector.load %arg3[%c0_35, %c0_36] : memref<32x96xf32, #tpu.memory_space<vmem>>, vector<32x96xf32>
      %cst_37 = arith.constant dense<0.000000e+00> : vector<16x96xf32>
      %74 = tpu.matmul %72, %73, %cst_37 {dimension_numbers = #tpu.dot_dimension_numbers<[1], [0], [0], [1], [0, 0, 1, 1], [], []>} : vector<16x32xf32>, vector<32x96xf32>, vector<16x96xf32> -> vector<16x96xf32>
      %c0_38 = arith.constant 0 : index
      %c0_39 = arith.constant 0 : index
      %75 = vector.load %arg4[%c0_38, %c0_39] : memref<1x96xf32, #tpu.memory_space<vmem>>, vector<1x96xf32>
      %76 = vector.broadcast %75 : vector<1x96xf32> to vector<16x96xf32>
      %77 = arith.addf %74, %76 : vector<16x96xf32>
      %78 = vector.extract_strided_slice %77 {offsets = [0, 0], sizes = [16, 32], strides = [1, 1]} : vector<16x96xf32> to vector<16x32xf32>
      %cst_40 = arith.constant 0.353553385 : f32
      %79 = vector.broadcast %cst_40 : f32 to vector<16x32xf32>
      %80 = arith.mulf %78, %79 : vector<16x32xf32>
      %c0_41 = arith.constant 0 : index
      %c0_42 = arith.constant 0 : index
      %81 = vector.load %arg6[%c0_41, %c0_42] : memref<16x32xf32, #tpu.memory_space<vmem>>, vector<16x32xf32>
      tpu.vector_store %arg6[%c0_41, %c0_42], %80 {strides = array<i32>} : memref<16x32xf32, #tpu.memory_space<vmem>>, vector<16x32xf32>,
      %82 = vector.extract_strided_slice %77 {offsets = [0, 32], sizes = [16, 32], strides = [1, 1]} : vector<16x96xf32> to vector<16x32xf32>
      %83 = tpu.transpose %82, [1, 0] : vector<16x32xf32> -> vector<32x16xf32>
      %c0_43 = arith.constant 0 : index
      %c0_44 = arith.constant 0 : index
      %84 = vector.load %arg7[%c0_43, %c0_44] : memref<32x16xf32, #tpu.memory_space<vmem>>, vector<32x16xf32>
      tpu.vector_store %arg7[%c0_43, %c0_44], %83 {strides = array<i32>} : memref<32x16xf32, #tpu.memory_space<vmem>>, vector<32x16xf32>,
      %85 = vector.extract_strided_slice %77 {offsets = [0, 64], sizes = [16, 32], strides = [1, 1]} : vector<16x96xf32> to vector<16x32xf32>
      %c0_45 = arith.constant 0 : index
      %c0_46 = arith.constant 0 : index
      %86 = vector.load %arg8[%c0_45, %c0_46] : memref<16x32xf32, #tpu.memory_space<vmem>>, vector<16x32xf32>
      tpu.vector_store %arg8[%c0_45, %c0_46], %85 {strides = array<i32>} : memref<16x32xf32, #tpu.memory_space<vmem>>, vector<16x32xf32>,
    } else {
    }
    %c16_i32 = arith.constant 16 : i32
    %3 = arith.muli %arg1, %c16_i32 : i32
    %4 = tpu.assume_multiple %3, 16 : i32
    %5 = arith.index_cast %4 : i32 to index
    %c0 = arith.constant 0 : index
    %6 = vector.load %arg6[%5, %c0] : memref<16x32xf32, #tpu.memory_space<vmem>>, vector<16x32xf32>
    %7 = vector.extract_strided_slice %6 {offsets = [0, 0], sizes = [16, 8], strides = [1, 1]} : vector<16x32xf32> to vector<16x8xf32>
    %c0_1 = arith.constant 0 : index
    %c0_2 = arith.constant 0 : index
    %8 = vector.load %arg7[%c0_1, %c0_2] : memref<32x16xf32, #tpu.memory_space<vmem>>, vector<8x16xf32>
    %c0_3 = arith.constant 0 : index
    %c0_4 = arith.constant 0 : index
    %9 = vector.load %arg8[%c0_3, %c0_4] : memref<16x32xf32, #tpu.memory_space<vmem>>, vector<16x8xf32>
    %cst = arith.constant dense<0.000000e+00> : vector<16x16xf32>
    %10 = tpu.matmul %7, %8, %cst {dimension_numbers = #tpu.dot_dimension_numbers<[1], [0], [0], [1], [0, 0, 1, 1], [], []>} : vector<16x8xf32>, vector<8x16xf32>, vector<16x16xf32> -> vector<16x16xf32>
    %cst_5 = arith.constant dense<0xFF800000> : vector<16xf32>
    %11 = vector.multi_reduction <maximumf>, %10, %cst_5 [1] : vector<16x16xf32> to vector<16xf32>
    %12 = vector.shape_cast %11 : vector<16xf32> to vector<16x1xf32>
    %13 = vector.broadcast %12 : vector<16x1xf32> to vector<16x16xf32>
    %14 = arith.subf %10, %13 : vector<16x16xf32>
    %15 = math.exp %14 : vector<16x16xf32>
    %cst_6 = arith.constant dense<0.000000e+00> : vector<16xf32>
    %16 = vector.multi_reduction <add>, %15, %cst_6 [1] : vector<16x16xf32> to vector<16xf32>
    %17 = vector.shape_cast %16 : vector<16xf32> to vector<16x1xf32>
    %18 = tpu.reciprocal %17 {approx = true} : vector<16x1xf32> -> vector<16x1xf32>
    %19 = vector.broadcast %18 : vector<16x1xf32> to vector<16x16xf32>
    %20 = arith.mulf %15, %19 : vector<16x16xf32>
    %cst_7 = arith.constant dense<0.000000e+00> : vector<16x8xf32>
    %21 = tpu.matmul %20, %9, %cst_7 {dimension_numbers = #tpu.dot_dimension_numbers<[1], [0], [0], [1], [0, 0, 1, 1], [], []>} : vector<16x16xf32>, vector<16x8xf32>, vector<16x8xf32> -> vector<16x8xf32>
    %22 = vector.extract_strided_slice %6 {offsets = [0, 8], sizes = [16, 8], strides = [1, 1]} : vector<16x32xf32> to vector<16x8xf32>
    %c8 = arith.constant 8 : index
    %c0_8 = arith.constant 0 : index
    %23 = vector.load %arg7[%c8, %c0_8] : memref<32x16xf32, #tpu.memory_space<vmem>>, vector<8x16xf32>
    %c0_9 = arith.constant 0 : index
    %c8_10 = arith.constant 8 : index
    %24 = vector.load %arg8[%c0_9, %c8_10] : memref<16x32xf32, #tpu.memory_space<vmem>>, vector<16x8xf32>
    %cst_11 = arith.constant dense<0.000000e+00> : vector<16x16xf32>
    %25 = tpu.matmul %22, %23, %cst_11 {dimension_numbers = #tpu.dot_dimension_numbers<[1], [0], [0], [1], [0, 0, 1, 1], [], []>} : vector<16x8xf32>, vector<8x16xf32>, vector<16x16xf32> -> vector<16x16xf32>
    %cst_12 = arith.constant dense<0xFF800000> : vector<16xf32>
    %26 = vector.multi_reduction <maximumf>, %25, %cst_12 [1] : vector<16x16xf32> to vector<16xf32>
    %27 = vector.shape_cast %26 : vector<16xf32> to vector<16x1xf32>
    %28 = vector.broadcast %27 : vector<16x1xf32> to vector<16x16xf32>
    %29 = arith.subf %25, %28 : vector<16x16xf32>
    %30 = math.exp %29 : vector<16x16xf32>
    %cst_13 = arith.constant dense<0.000000e+00> : vector<16xf32>
    %31 = vector.multi_reduction <add>, %30, %cst_13 [1] : vector<16x16xf32> to vector<16xf32>
    %32 = vector.shape_cast %31 : vector<16xf32> to vector<16x1xf32>
    %33 = tpu.reciprocal %32 {approx = true} : vector<16x1xf32> -> vector<16x1xf32>
    %34 = vector.broadcast %33 : vector<16x1xf32> to vector<16x16xf32>
    %35 = arith.mulf %30, %34 : vector<16x16xf32>
    %cst_14 = arith.constant dense<0.000000e+00> : vector<16x8xf32>
    %36 = tpu.matmul %35, %24, %cst_14 {dimension_numbers = #tpu.dot_dimension_numbers<[1], [0], [0], [1], [0, 0, 1, 1], [], []>} : vector<16x16xf32>, vector<16x8xf32>, vector<16x8xf32> -> vector<16x8xf32>
    %37 = vector.extract_strided_slice %6 {offsets = [0, 16], sizes = [16, 8], strides = [1, 1]} : vector<16x32xf32> to vector<16x8xf32>
    %c16 = arith.constant 16 : index
    %c0_15 = arith.constant 0 : index
    %38 = vector.load %arg7[%c16, %c0_15] : memref<32x16xf32, #tpu.memory_space<vmem>>, vector<8x16xf32>
    %c0_16 = arith.constant 0 : index
    %c16_17 = arith.constant 16 : index
    %39 = vector.load %arg8[%c0_16, %c16_17] : memref<16x32xf32, #tpu.memory_space<vmem>>, vector<16x8xf32>
    %cst_18 = arith.constant dense<0.000000e+00> : vector<16x16xf32>
    %40 = tpu.matmul %37, %38, %cst_18 {dimension_numbers = #tpu.dot_dimension_numbers<[1], [0], [0], [1], [0, 0, 1, 1], [], []>} : vector<16x8xf32>, vector<8x16xf32>, vector<16x16xf32> -> vector<16x16xf32>
    %cst_19 = arith.constant dense<0xFF800000> : vector<16xf32>
    %41 = vector.multi_reduction <maximumf>, %40, %cst_19 [1] : vector<16x16xf32> to vector<16xf32>
    %42 = vector.shape_cast %41 : vector<16xf32> to vector<16x1xf32>
    %43 = vector.broadcast %42 : vector<16x1xf32> to vector<16x16xf32>
    %44 = arith.subf %40, %43 : vector<16x16xf32>
    %45 = math.exp %44 : vector<16x16xf32>
    %cst_20 = arith.constant dense<0.000000e+00> : vector<16xf32>
    %46 = vector.multi_reduction <add>, %45, %cst_20 [1] : vector<16x16xf32> to vector<16xf32>
    %47 = vector.shape_cast %46 : vector<16xf32> to vector<16x1xf32>
    %48 = tpu.reciprocal %47 {approx = true} : vector<16x1xf32> -> vector<16x1xf32>
    %49 = vector.broadcast %48 : vector<16x1xf32> to vector<16x16xf32>
    %50 = arith.mulf %45, %49 : vector<16x16xf32>
    %cst_21 = arith.constant dense<0.000000e+00> : vector<16x8xf32>
    %51 = tpu.matmul %50, %39, %cst_21 {dimension_numbers = #tpu.dot_dimension_numbers<[1], [0], [0], [1], [0, 0, 1, 1], [], []>} : vector<16x16xf32>, vector<16x8xf32>, vector<16x8xf32> -> vector<16x8xf32>
    %52 = vector.extract_strided_slice %6 {offsets = [0, 24], sizes = [16, 8], strides = [1, 1]} : vector<16x32xf32> to vector<16x8xf32>
    %c24 = arith.constant 24 : index
    %c0_22 = arith.constant 0 : index
    %53 = vector.load %arg7[%c24, %c0_22] : memref<32x16xf32, #tpu.memory_space<vmem>>, vector<8x16xf32>
    %c0_23 = arith.constant 0 : index
    %c24_24 = arith.constant 24 : index
    %54 = vector.load %arg8[%c0_23, %c24_24] : memref<16x32xf32, #tpu.memory_space<vmem>>, vector<16x8xf32>
    %cst_25 = arith.constant dense<0.000000e+00> : vector<16x16xf32>
    %55 = tpu.matmul %52, %53, %cst_25 {dimension_numbers = #tpu.dot_dimension_numbers<[1], [0], [0], [1], [0, 0, 1, 1], [], []>} : vector<16x8xf32>, vector<8x16xf32>, vector<16x16xf32> -> vector<16x16xf32>
    %cst_26 = arith.constant dense<0xFF800000> : vector<16xf32>
    %56 = vector.multi_reduction <maximumf>, %55, %cst_26 [1] : vector<16x16xf32> to vector<16xf32>
    %57 = vector.shape_cast %56 : vector<16xf32> to vector<16x1xf32>
    %58 = vector.broadcast %57 : vector<16x1xf32> to vector<16x16xf32>
    %59 = arith.subf %55, %58 : vector<16x16xf32>
    %60 = math.exp %59 : vector<16x16xf32>
    %cst_27 = arith.constant dense<0.000000e+00> : vector<16xf32>
    %61 = vector.multi_reduction <add>, %60, %cst_27 [1] : vector<16x16xf32> to vector<16xf32>
    %62 = vector.shape_cast %61 : vector<16xf32> to vector<16x1xf32>
    %63 = tpu.reciprocal %62 {approx = true} : vector<16x1xf32> -> vector<16x1xf32>
    %64 = vector.broadcast %63 : vector<16x1xf32> to vector<16x16xf32>
    %65 = arith.mulf %60, %64 : vector<16x16xf32>
    %cst_28 = arith.constant dense<0.000000e+00> : vector<16x8xf32>
    %66 = tpu.matmul %65, %54, %cst_28 {dimension_numbers = #tpu.dot_dimension_numbers<[1], [0], [0], [1], [0, 0, 1, 1], [], []>} : vector<16x16xf32>, vector<16x8xf32>, vector<16x8xf32> -> vector<16x8xf32>
    %67 = tpu.concatenate %21, %36, %51, %66 in 1 : vector<16x8xf32>, vector<16x8xf32>, vector<16x8xf32>, vector<16x8xf32> -> vector<16x32xf32>
    %c0_29 = arith.constant 0 : index
    %c0_30 = arith.constant 0 : index
    %c0_31 = arith.constant 0 : index
    %68 = vector.load %arg5[%c0_29, %c0_30, %c0_31] : memref<1x16x32xf32, #tpu.memory_space<vmem>>, vector<1x16x32xf32>
    %69 = vector.shape_cast %68 : vector<1x16x32xf32> to vector<16x32xf32>
    %70 = vector.shape_cast %67 : vector<16x32xf32> to vector<1x16x32xf32>
    tpu.vector_store %arg5[%c0_29, %c0_30, %c0_31], %70 {strides = array<i32>} : memref<1x16x32xf32, #tpu.memory_space<vmem>>, vector<1x16x32xf32>,
    return
  }
  func.func @transform_0(%arg0: i32, %arg1: i32) -> (i32, i32, i32) {
    %c0_i32 = arith.constant 0 : i32
    %c0_i32_0 = arith.constant 0 : i32
    %c0_i32_1 = arith.constant 0 : i32
    return %arg0, %c0_i32, %c0_i32_0 : i32, i32, i32
  }
  func.func @transform_1(%arg0: i32, %arg1: i32) -> (i32, i32) {
    %c0_i32 = arith.constant 0 : i32
    %c0_i32_0 = arith.constant 0 : i32
    %c0_i32_1 = arith.constant 0 : i32
    return %c0_i32, %c0_i32_0 : i32, i32
  }
  func.func @transform_2(%arg0: i32, %arg1: i32) -> (i32, i32) {
    %c0_i32 = arith.constant 0 : i32
    %c0_i32_0 = arith.constant 0 : i32
    %c0_i32_1 = arith.constant 0 : i32
    return %c0_i32, %c0_i32_0 : i32, i32
  }
  func.func @transform_3(%arg0: i32, %arg1: i32) -> (i32, i32, i32) {
    %c0_i32 = arith.constant 0 : i32
    %c0_i32_0 = arith.constant 0 : i32
    return %arg0, %arg1, %c0_i32 : i32, i32, i32
  }
}

</mosaic_0001>

<bundles_post_ra>
// kernel: tpu_custom_call.1
= control target key start
LH: loop header
LB: loop body
LE: loop exit
PB: predicated region body
PF: predicated region fallthrough
CT: control target
= control target key end

     0   :  { %8 = vsyncpa [#allocation6], 0  ;;  %s2065_s0 = inlined_call_operand.hbm [shape: f32[2,16,32], index: 0, kind: input, shape index: {}]   ;;  %s2066_s1 = inlined_call_operand.hbm [shape: f32[32,96], index: 1, kind: input, shape index: {}]   ;;  %s2067_s2 = inlined_call_operand.vmem [shape: f32[1,96], index: 2, kind: input, shape index: {}]   ;;  %s2068_s3 = inlined_call_operand.hbm [shape: f32[2,16,32], index: 3, kind: output, shape index: {}]  }
   0x1   :  { %10 = vsyncpa [#allocation6 + $0x1], 0 }
   0x2   :  { %11 = vsyncpa [#allocation9], 0 }
   0x3   :  { %12 = vsyncpa [#allocation7], 0 }
   0x4   :  { %14 = vsyncpa [#allocation7 + $0x1], 0  ;;  %s1762_s12 = smov 0   ;;  %s1764_s13 = smov 0  }
   0x5   :  { %s1766_s14 = smov 0   ;;  %s1768_s15 = smov 0  }
   0x6   :  { %s1770_s16 = smov 0   ;;  %s1772_s17 = smov 0  }
   0x7 LB: > { %s1295_s18 = sadd.s32 4294967295, %s1726_s17   ;;  %s1296_s19 = sadd.s32 4294967294, %s1726_s17   ;;  %s1726_s17 = sphi %s1772_s17, %s20_s17   ;;  %s1722_s16 = sphi %s1770_s16, %s2092_s16   ;;  %s1718_s15 = sphi %s1768_s15, %s2091_s15   ;;  %s1714_s14 = sphi %s1766_s14, %s2090_s14   ;;  %s1710_s13 = sphi %s1764_s13, %s2089_s13   ;;  %s1706_s12 = sphi %s1762_s12, %s2088_s12  }
   0x8   : > { %p52_p0 = scmp.ne.s32.totalorder %s1710_s13, %s1706_s12  ;;  %p1796_p1 = scmp.eq.s32.totalorder %s1295_s18, 0 }
   0x9   : > { %p1800_p2 = scmp.eq.s32.totalorder %s1295_s18, 1  ;;  %p126_p3 = scmp.eq.s32.totalorder %s1296_s19, 1 }
   0xa   : > { %s2073_s20 = scalar_select %p1796_p1, 1, 0 }
   0xb   : > { %s2074_s21 = scalar_select %p1800_p2, 1, 0 }
   0xc   : > { %p1806_p4 = por %p1796_p1, %p52_p0  ;;  %p1297_p5 = scmp.ge.s32.totalorder %s1726_s17, 1 }
   0xd   : > { %p1811_p6 = por %p126_p3, %p52_p0  ;;  %p133_p7 = scmp.lt.s32.totalorder %s1726_s17, 3 }
   0xe   : > { %s2075_s22 = scalar_select %p1806_p4, 1, 0 }
   0xf   : > { %s2076_s23 = scalar_select %p1811_p6, 1, 0 }
  0x10   : > { %p1816_p8 = pnand %p1297_p5, %p133_p7  ;;  %s1728_s25 = smov [#allocation8]  }
  0x11   : > { %s145_s26 = sshll.u32 %s1728_s25, 4  ;;  %s32_s28 = sadd.s32 1, %s1722_s16  ;;  %s146_s26 = int_to_ptr.vmem [resolvable:$true] %s145_s26 }
  0x12   : > { %s2077_s24 = scalar_select %p1816_p8, 1, 0 }
  0x13   : > { %p1458_p9 = pneg %p1816_p8  ;;  %s1582_s4 = scalar_lea.hbm %s2066_s1, 512 }
  0x14   : > { %p1583_p12 = scmp.ne.s32.totalorder %s2066_s1, %s1582_s4  ;;  %p1589_p5 = scmp.lt.u32.totalorder %s1582_s4, %s2066_s1 }
  0x15   : > { %p1825_p11 = pnand %p1458_p9, %p1796_p1 }
  0x17   : > { %p1584_p13 = pneg %p1825_p11 }
  0x19   : > { %p1585_p0 = pnand %p1584_p13, %p1583_p12 }
  0x1b   : > { %p1586_p3 = pneg %p1585_p0 }
  0x1d   : > { %p1591_p7 = pnand %p1589_p5, %p1586_p3 }
  0x1f   : > { %1594 = shalt.err (!%p1591_p7)
}
  0x20   : > { %s1595_s9 = scalar_lea.vmem %s146_s26, 512  ;;  %p1603_p1 = scmp.lt.s32.totalorder %s146_s26, %s146_s26 }
  0x21   : > { %p1596_p9 = scmp.ne.s32.totalorder %s146_s26, %s1595_s9  ;;  %p1604_p4 = scmp.lt.s32.totalorder %s1595_s9, %s1595_s9 }
  0x23   : > { %p1598_p10 = pnand %p1596_p9, %p1584_p13  ;;  %p1605_p8 = por %p1604_p4, %p1603_p1 }
  0x25   : > { %p1599_p6 = pneg %p1598_p10 }
  0x27   : > { %p1606_p2 = pnand %p1605_p8, %p1599_p6 }
  0x29   : > { %1609 = shalt.err (!%p1606_p2)
}
  0x2a   : > { %s1729_s10 = smov 128   ;;  %s1730_s11 = smov 8  }
  0x2b   : > { %1461 = dma.hbm_to_vmem [thread:$0]  (!%p1825_p11), %s2066_s1, 512, %s146_s26, [#allocation9], %s1729_s10, %s1729_s10, %s1730_s11  }
  0x2c   : > { %p34_p1 = scmp.ge.s32.totalorder %s32_s28, 2  ;;  %s39_s25 = sadd.s32 1, %s1714_s14 }
  0x2d   : > { %p46_p2 = scmp.ne.s32.totalorder %s1714_s14, %s1710_s13  ;;  %p47_p4 = scmp.eq.s32.totalorder %s1726_s17, 0 }
  0x2e   : > { %s2094_s28 = smov (%p34_p1, %s32_s28), 0  ;;  %p2080_p8 = scmp.ne.s32.totalorder %s2074_s21, 0 }
  0x2f   : > { %p1855_p6 = por %p47_p4, %p46_p2  ;;  %s36_s30 = ssub.s32 %s1722_s16, %s2094_s28 }
  0x30   : > { %p1861_p10 = por %p2080_p8, %p46_p2  ;;  %p1471_p12 = scmp.lt.s32.totalorder %s1726_s17, 2 }
  0x31   : > { %p37_p11 = scmp.eq.s32.totalorder %s36_s30, 0  ;;  %s162_s26 = sand.u32 1, %s1714_s14  }
  0x32   : > { %s1300_s4 = sshll.u32 %s162_s26, 4  ;;  %s1331_s6 = sshll.u32 %s1722_s16, 8 }
  0x33   : > { %s1870_s5 = scalar_select %p37_p11, %s1714_s14, %s39_s25  }
  0x34   : > { %s1876_s9 = scalar_lea.hbm %s2065_s0, %s1331_s6  ;;  %s166_s21 = scalar_lea.vmem [#allocation5], %s1300_s4 }
  0x35   : > { %s173_s18 = sshll.u32 %s166_s21, 4  ;;  %p1882_p13 = pnand %p1471_p12, %p1855_p6  ;;  %s1878_s18 = int_to_ptr.vmem [resolvable:$true] %s173_s18 }
  0x36   : > { %s1886_s25 = scalar_lea.sflag [#allocation6], %s162_s26  ;;  %s1610_s30 = scalar_lea.hbm %s1876_s9, 256 }
  0x37   : > { %p1611_p0 = scmp.ne.s32.totalorder %s1876_s9, %s1610_s30  ;;  %p1612_p3 = pneg %p1882_p13 }
  0x38   : > { %s1615_s29 = scalar_lea.hbm %s2065_s0, 512  ;;  %p1616_p9 = scmp.lt.u32.totalorder %s1876_s9, %s2065_s0 }
  0x39   : > { %p1613_p5 = pnand %p1612_p3, %p1611_p0  ;;  %p1617_p1 = scmp.lt.u32.totalorder %s1615_s29, %s1610_s30 }
  0x3a   : > { %p1619_p4 = scmp.lt.u32.totalorder %s1610_s30, %s1876_s9 }
  0x3b   : > { %p1614_p7 = pneg %p1613_p5  ;;  %p1618_p2 = por %p1617_p1, %p1616_p9 }
  0x3d   : > { %p1620_p6 = por %p1619_p4, %p1618_p2 }
  0x3f   : > { %p1621_p8 = pnand %p1620_p6, %p1614_p7 }
  0x41   : > { %1624 = shalt.err (!%p1621_p8)
}
  0x42   : > { %s1625_s26 = scalar_lea.vmem %s1878_s18, 256  ;;  %s1731_s21 = smov [#allocation5]  }
  0x43   : > { %p1626_p12 = scmp.ne.s32.totalorder %s1878_s18, %s1625_s26  ;;  %s1630_s4 = sshll.u32 %s1731_s21, 4  ;;  %s1631_s4 = int_to_ptr.vmem [resolvable:$false] %s1630_s4 }
  0x44   : > { %s1632_s6 = scalar_lea.vmem %s1631_s4, 512  ;;  %p1633_p5 = scmp.lt.s32.totalorder %s1878_s18, %s1631_s4 }
  0x45   : > { %p1628_p11 = pnand %p1626_p12, %p1612_p3  ;;  %p1634_p9 = scmp.lt.s32.totalorder %s1632_s6, %s1625_s26 }
  0x47   : > { %p1629_p0 = pneg %p1628_p11  ;;  %p1635_p1 = por %p1634_p9, %p1633_p5 }
  0x49   : > { %p1636_p2 = pnand %p1635_p1, %p1629_p0 }
  0x4b   : > { %1639 = shalt.err (!%p1636_p2)
}
  0x4c   : > { %1465 = dma.hbm_to_vmem [thread:$0]  (!%p1882_p13), %s1876_s9, 256, %s1878_s18, %s1886_s25, %s1729_s10, %s1729_s10, %s1730_s11  }
  0x4d   : > { %p2083_p3 = scmp.ne.s32.totalorder %s2077_s24, 0 }
  0x4e   : > { %s1920_s30 = sand.u32 (!%p2083_p3), 1, %s1710_s13   ;;  %p2084_p7 = scmp.ne.s32.totalorder (!%p2083_p3), %s2075_s22, 0 }
  0x4f   : > { %185 = sbr.rel (%p2083_p3) target bundleno = 1995 (0x7cb), region = 32  ;;  %s1304_s29 = sshll.u32 (!%p2083_p3), %s1920_s30, 4 }
  0x50   : > { %s188_s7 = scalar_lea.sflag (!%p2083_p3), [#allocation6], %s1920_s30  ;;  %s191_s19 = scalar_lea.vmem (!%p2083_p3), [#allocation5], %s1304_s29 }
  0x56   : > { %1693 = dma.done.wait (%p2084_p7), %s188_s7, 256  }
  0x57   : > { %1695 = vsyncadd (%p2084_p7), %s188_s7, 4294967040  ;;  %p2085_p13 = scmp.ne.s32.totalorder %s2073_s20, 0 }
  0x59   : > { %1697 = dma.done.wait (%p2085_p13), [#allocation9], 512  }
  0x5a   : > { %1699 = vsyncadd (%p2085_p13), [#allocation9], 4294966784  ;;  %vm236_vm0 = vcmask 261120   ;;  %v225_v0 = vld [vmem:[#allocation8] sm:$0xff]  ;;  %v226_v1 = vld [vmem:[#allocation8 + $0x8] sm:$0xff]  ;;  %s1732_s24 = smov 96  }
  0x5b   : > { %v227_v2 = vld [vmem:[#allocation8 + $0x10] sm:$0xff]  ;;  %v1426_v3 = vpack.c.bf16 %v226_v1, %v225_v0  ;;  %v228_v4 = vld [vmem:[#allocation8 + $0x18] sm:$0xff]  ;;  %v1307_v8 = vld [vmem:[%s2067_s2] ss:$0 sm:$0xff]  ;;  %vm382_vm1 = vcmask 64512   ;;  %vm362_vm2 = vcmask 130048  }
  0x5c   : > { %v223_v5 = vld [vmem:[%s191_s19] sm:$0xff]  ;;  %v1430_v6 = vpack.c.bf16 %v228_v4, %v227_v2  ;;  %v224_v7 = vld [vmem:[%s191_s19 + $0x8] sm:$0xff]  ;;  %s1733_s10 = smov 64   ;;  %s1734_s11 = smov 120   ;;  %vm1177_vm3 = vcmask 195584  }
  0x5d   : > { %1375 = vmatprep.mubr.msk.f32.mxu0 %vm236_vm0, %v223_v5  ;;  %1427 = vmatprep.subr.bf16.mxu0 %v1426_v3  ;;  %s1735_s9 = smov 112   ;;  %s1736_s18 = smov 104  }
  0x5e   : > { %1429 = vmatpush3.bf16.msra.mxu0 %v1426_v3  ;;  %s1737_s25 = smov 8   ;;  %s1738_s8 = smov 16  }
  0x5f   : > { %1431 = vmatprep.subr.bf16.mxu0 %v1430_v6  ;;  %s1739_s26 = smov 24   ;;  %s217_s21 = scalar_lea.vmem [#allocation10], %s1304_s29 }
  0x60   : > { %s1199_s4 = sshll.u32 %s217_s21, 4  ;;  %s1332_s6 = sshll.u32 %s1718_s15, 8  ;;  %s2007_s4 = int_to_ptr.vmem [resolvable:$true] %s1199_s4 }
  0x61   : > { %s2013_s7 = scalar_lea.hbm %s2068_s3, %s1332_s6  ;;  %s1184_s19 = scalar_lea.sflag [#allocation7], %s1920_s30 }
  0x62   : > { %1433 = vmatpush3.bf16.msra.mxu0 %v1430_v6  ;;  %s1640_s22 = scalar_lea.vmem %s2007_s4, 256  ;;  %s1740_s20 = smov [#allocation10]  }
  0x63   : > { %p1641_p4 = scmp.ne.s32.totalorder %s2007_s4, %s1640_s22 }
  0x65   : > { %1376 = vmatmul.mubr.msk.f32.vlgmr.msra.gmra.mrb[0].mxu0 %vm236_vm0, %v224_v7  ;;  %p1642_p6 = pnand %p1641_p4, %p1861_p10 }
  0x67   : > { %p1643_p8 = pneg %p1642_p6 }
 0x138   : > { %v1377_v9 = vpop.f32.mrb[0].mxu0 }
 0x139   : > { %v315_v10 = vadd.f32 %v1377_v9, %v1307_v8  ;;  %v309_v11 = vpop.f32.mrb[1].mxu0 }
 0x13a   : > { %v310_v12 = vadd.f32 %v1307_v8, %v309_v11 }
 0x13b   : > { %v319_v13 = vmul.f32 0.35355338, %v315_v10 }
 0x13c   : > { %v318_v14 = vmul.f32 0.35355338, %v310_v12  ;;  %324 = vrot.lane.b32.xlu0 %v310_v12, %s1732_s24 }
 0x13d   : > { %321 = vst.msk [vmem:[#allocation2 + $0x8] sm:$0xff] %vm236_vm0, %v319_v13 }
 0x13e   : > { %320 = vst.msk [vmem:[#allocation2] sm:$0xff] %vm236_vm0, %v318_v14 }
 0x140   : > { %326 = vrot.lane.b32.xlu0 %v315_v10, %s1732_s24  ;;  %s1644_s24 = sshll.u32 %s1740_s20, 4  ;;  %s1645_s24 = int_to_ptr.vmem [resolvable:$false] %s1644_s24 }
 0x141   : > { %p1647_p12 = scmp.lt.s32.totalorder %s2007_s4, %s1645_s24 }
 0x144   : > { %v378_v20 = vld [vmem:[#allocation2 + $0x8] sm:$0xff] }
 0x145   : > { %v377_v15 = vld [vmem:[#allocation2] sm:$0xff] }
 0x146   : > { %1380 = vmatprep.mubr.msk.f32.mxu1 %vm382_vm1, %v377_v15 }
 0x1ae   : > { %v325_v16 = vpop.permute.xlu0 %324 }
 0x1af   : > { %330 = vxpose.xlu1.b32.start [1/2] (short) (narrow) %v325_v16, 32 }
 0x1b2   : > { %v327_v17 = vpop.permute.xlu0 %326 }
 0x1b3   : > { %331 = vxpose.xlu1.b32.end [2/2] (short) (narrow) %v327_v17, 32 }
 0x22f   : > { %v346_v18 = vpop.trf.xlu1 }
 0x230   : > { %363 = vst.msk [vmem:[#allocation3] sm:$0xff] %vm362_vm2, %v346_v18 }
 0x233   : > { %v347_v21 = vpop.trf.xlu1 }
 0x234   : > { %364 = vst.msk [vmem:[#allocation3 + $0x8] sm:$0xff] %vm362_vm2, %v347_v21 }
 0x237   : > { %v379_v19 = vld [vmem:[#allocation3] sm:$0xff]  ;;  %v348_v22 = vpop.trf.xlu1 }
 0x238   : > { %1378 = vmatprep.subr.mxu1 %v379_v19  ;;  %365 = vst.msk [vmem:[#allocation3 + $0x10] sm:$0xff] %vm362_vm2, %v348_v22 }
 0x239   : > { %1379 = vmatpush3.msra.mxu1 %v379_v19 }
 0x23a   : > { %1381 = vmatmul.mubr.msk.f32.vlgmr.msra.gmra.mrb[0].mxu1 %vm382_vm1, %v378_v20 }
 0x23b   : > { %v349_v23 = vpop.trf.xlu1  ;;  %v568_v43 = vld [vmem:[#allocation3 + $0x8] sm:$0xff] }
 0x23c   : > { %366 = vst.msk [vmem:[#allocation3 + $0x18] sm:$0xff] %vm362_vm2, %v349_v23 }
 0x23f   : > { %v763_v53 = vld [vmem:[#allocation3 + $0x10] sm:$0xff] }
 0x243   : > { %v956_v56 = vld [vmem:[#allocation3 + $0x18] sm:$0xff] }
 0x30d   : > { %v1382_v24 = vpop.f32.mrb[0].mxu1 }
 0x30e   : > { %v455_v25 = vpop.f32.mrb[1].mxu1  ;;  %v468_v26 = vsel %vm362_vm2, %v1382_v24, -inf }
 0x30f   : > { %469 = vmax.xlane.f32.xlu1 %v468_v26  ;;  %v465_v27 = vsel %vm362_vm2, %v455_v25, -inf }
 0x310   : > { %466 = vmax.xlane.f32.xlu0 %v465_v27 }
 0x320   : > { %369 = vrot.lane.b32.xlu1 %v315_v10, %s1733_s10 }
 0x324   : > { %571 = vrot.lane.b32.xlu1 %v378_v20, %s1734_s11 }
 0x326   : > { %367 = vrot.lane.b32.xlu0 %v310_v12, %s1733_s10  ;;  %s1646_s10 = scalar_lea.vmem %s1645_s24, 512 }
 0x327   : > { %p1648_p11 = scmp.lt.s32.totalorder %s1646_s10, %s1640_s22 }
 0x328   : > { %766 = vrot.lane.b32.xlu1 %v378_v20, %s1735_s9 }
 0x329   : > { %p1649_p0 = por %p1648_p11, %p1647_p12 }
 0x32b   : > { %p1650_p5 = pnand %p1649_p0, %p1643_p8 }
 0x32c   : > { %959 = vrot.lane.b32.xlu1 %v378_v20, %s1736_s18 }
 0x39c   : > { %v470_v28 = vpop.xlane.xlu1 %469 }
 0x39d   : > { %v472_v29 = vsub.f32 %v1382_v24, %v470_v28  ;;  %v467_v30 = vpop.xlane.xlu0 %466 }
 0x39e   : > { %v471_v31 = vsub.f32 %v455_v25, %v467_v30 }
 0x39f   : > { %v475_v32 = vmul.f32 1.442695, %v472_v29 }
 0x3a0   : > { %v473_v33 = vmul.f32 1.442695, %v471_v31  ;;  %v370_v34 = vpop.permute.xlu1 %369 }
 0x3a1   : > { %1550 = vpow2.f32 %v475_v32  ;;  %374 = vst.msk [vmem:[#allocation4 + $0x8] sm:$0xff] %vm236_vm0, %v370_v34  ;;  %v368_v35 = vpop.permute.xlu0 %367 }
 0x3a2   : > { %373 = vst.msk [vmem:[#allocation4] sm:$0xff] %vm236_vm0, %v368_v35  ;;  %1552 = vpow2.f32 %v473_v33 }
 0x3a4   : > { %v572_v52 = vpop.permute.xlu1 %571 }
 0x3a8   : > { %v381_v36 = vld [vmem:[#allocation4 + $0x8] sm:$0xff]  ;;  %v767_v55 = vpop.permute.xlu1 %766 }
 0x3a9   : > { %v380_v37 = vld [vmem:[#allocation4] sm:$0xff] }
 0x3aa   : > { %v1434_v38 = vpack.c.bf16 %v381_v36, %v380_v37  ;;  %v1954_v39 = vpack.i.bf16 %v381_v36, %v380_v37 }
 0x3ab   : > { %v1551_v40 = vpop.eup %1550 }
 0x3ac   : > { %1435 = vmatprep.subr.bf16.mxu1 %v1434_v38  ;;  %v480_v41 = vsel %vm362_vm2, %v1551_v40, 0.0  ;;  %v1553_v42 = vpop.eup %1552  ;;  %v960_v58 = vpop.permute.xlu1 %959 }
 0x3ad   : > { %481 = vadd.xlane.f32.xlu0 %v480_v41  ;;  %1437 = vmatpush3.bf16.msra.mxu1 %v1434_v38  ;;  %v477_v44 = vsel %vm362_vm2, %v1553_v42, 0.0 }
 0x3ae   : > { %1390 = vmatprep.subr.mxu1 %v568_v43 }
 0x3b1   : > { %478 = vadd.xlane.f32.xlu0 %v477_v44 }
 0x3c7   : > { %569 = vrot.lane.b32.xlu0 %v377_v15, %s1734_s11 }
 0x3cb   : > { %764 = vrot.lane.b32.xlu0 %v377_v15, %s1735_s9 }
 0x3cf   : > { %957 = vrot.lane.b32.xlu0 %v377_v15, %s1736_s18 }
 0x43a   : > { %v482_v45 = vpop.xlane.xlu0 %481 }
 0x43b   : > { %1554 = vrcp.f32 %v482_v45 }
 0x43e   : > { %v479_v46 = vpop.xlane.xlu0 %478 }
 0x43f   : > { %1556 = vrcp.f32 %v479_v46 }
 0x442   : > { %v570_v49 = vpop.permute.xlu0 %569 }
 0x445   : > { %v1555_v47 = vpop.eup %1554 }
 0x446   : > { %v486_v51 = vmul.f32 %v1555_v47, %v1551_v40  ;;  %v765_v54 = vpop.permute.xlu0 %764 }
 0x449   : > { %v1557_v48 = vpop.eup %1556 }
 0x44a   : > { %v485_v50 = vmul.f32 %v1557_v48, %v1553_v42  ;;  %v958_v57 = vpop.permute.xlu0 %957 }
 0x44c   : > { %1387 = vmatprep.mubr.msk.f32.mxu1 %vm362_vm2, %v485_v50 }
 0x44d   : > { %1388 = vmatmul.mubr.msk.f32.vlgmr.msra.gmra.mrb[2].mxu1 %vm362_vm2, %v486_v51 }
 0x44e   : > { %1391 = vmatpush3.msra.mxu1 %v568_v43  ;;  %1392 = vmatprep.mubr.msk.f32.mxu1 %vm382_vm1, %v570_v49 }
 0x44f   : > { %1402 = vmatprep.subr.mxu1 %v763_v53 }
 0x451   : > { %1393 = vmatmul.mubr.msk.f32.vlgmr.msra.gmra.mrb[4].mxu1 %vm382_vm1, %v572_v52 }
 0x452   : > { %1403 = vmatpush3.msra.mxu1 %v763_v53  ;;  %1404 = vmatprep.mubr.msk.f32.mxu1 %vm382_vm1, %v765_v54 }
 0x453   : > { %1414 = vmatprep.subr.mxu1 %v956_v56 }
 0x455   : > { %1405 = vmatmul.mubr.msk.f32.vlgmr.msra.gmra.mrb[6].mxu1 %vm382_vm1, %v767_v55 }
 0x456   : > { %1415 = vmatpush3.msra.mxu1 %v956_v56  ;;  %1416 = vmatprep.mubr.msk.f32.mxu1 %vm382_vm1, %v958_v57 }
 0x459   : > { %1417 = vmatmul.mubr.msk.f32.vlgmr.msra.gmra.mrb[8].mxu1 %vm382_vm1, %v960_v58 }
 0x520   : > { %v1969_v59 = vpop.f32.mrb[2].mxu1 }
 0x521   : > { %v1971_v60 = vpop.f32.mrb[3].mxu1 }
 0x524   : > { %v1394_v61 = vpop.f32.mrb[4].mxu1 }
 0x525   : > { %v643_v62 = vpop.f32.mrb[5].mxu1  ;;  %v655_v63 = vsel %vm362_vm2, %v1394_v61, -inf }
 0x526   : > { %656 = vmax.xlane.f32.xlu1 %v655_v63  ;;  %v652_v0 = vsel %vm362_vm2, %v643_v62, -inf }
 0x527   : > { %653 = vmax.xlane.f32.xlu0 %v652_v0 }
 0x528   : > { %v1406_v1 = vpop.f32.mrb[6].mxu1 }
 0x529   : > { %v838_v2 = vpop.f32.mrb[7].mxu1  ;;  %v850_v3 = vsel %vm362_vm2, %v1406_v1, -inf }
 0x52a   : > { %v847_v7 = vsel %vm362_vm2, %v838_v2, -inf }
 0x52b   : > { %851 = vmax.xlane.f32.xlu0 %v850_v3 }
 0x52c   : > { %v1418_v4 = vpop.f32.mrb[8].mxu1 }
 0x52d   : > { %v1031_v5 = vpop.f32.mrb[9].mxu1  ;;  %v1043_v6 = vsel %vm362_vm2, %v1418_v4, -inf }
 0x52e   : > { %1044 = vmax.xlane.f32.xlu1 %v1043_v6  ;;  %v1040_v8 = vsel %vm362_vm2, %v1031_v5, -inf }
 0x52f   : > { %848 = vmax.xlane.f32.xlu0 %v847_v7 }
 0x533   : > { %1041 = vmax.xlane.f32.xlu0 %v1040_v8 }
 0x5b3   : > { %v657_v9 = vpop.xlane.xlu1 %656 }
 0x5b4   : > { %v659_v10 = vsub.f32 %v1394_v61, %v657_v9  ;;  %v654_v11 = vpop.xlane.xlu0 %653 }
 0x5b5   : > { %v658_v12 = vsub.f32 %v643_v62, %v654_v11 }
 0x5b6   : > { %v662_v13 = vmul.f32 1.442695, %v659_v10 }
 0x5b7   : > { %v660_v14 = vmul.f32 1.442695, %v658_v12 }
 0x5b8   : > { %1558 = vpow2.f32 %v662_v13  ;;  %v852_v15 = vpop.xlane.xlu0 %851 }
 0x5b9   : > { %1560 = vpow2.f32 %v660_v14  ;;  %v854_v16 = vsub.f32 %v1406_v1, %v852_v15 }
 0x5bb   : > { %v857_v17 = vmul.f32 1.442695, %v854_v16  ;;  %v1045_v18 = vpop.xlane.xlu1 %1044 }
 0x5bc   : > { %v1047_v19 = vsub.f32 %v1418_v4, %v1045_v18  ;;  %v849_v20 = vpop.xlane.xlu0 %848 }
 0x5bd   : > { %1562 = vpow2.f32 %v857_v17  ;;  %v853_v21 = vsub.f32 %v838_v2, %v849_v20 }
 0x5be   : > { %v1050_v22 = vmul.f32 1.442695, %v1047_v19 }
 0x5bf   : > { %v855_v23 = vmul.f32 1.442695, %v853_v21 }
 0x5c0   : > { %1564 = vpow2.f32 %v1050_v22  ;;  %v1042_v24 = vpop.xlane.xlu0 %1041 }
 0x5c1   : > { %1566 = vpow2.f32 %v855_v23  ;;  %v1046_v25 = vsub.f32 %v1031_v5, %v1042_v24 }
 0x5c2   : > { %v1559_v26 = vpop.eup %1558 }
 0x5c3   : > { %v1561_v27 = vpop.eup %1560  ;;  %v1048_v28 = vmul.f32 1.442695, %v1046_v25  ;;  %v667_v29 = vsel %vm362_vm2, %v1559_v26, 0.0 }
 0x5c4   : > { %668 = vadd.xlane.f32.xlu1 %v667_v29  ;;  %v664_v30 = vsel %vm362_vm2, %v1561_v27, 0.0 }
 0x5c5   : > { %1568 = vpow2.f32 %v1048_v28  ;;  %665 = vadd.xlane.f32.xlu0 %v664_v30 }
 0x5c7   : > { %v1563_v31 = vpop.eup %1562 }
 0x5c8   : > { %v862_v32 = vsel %vm362_vm2, %v1563_v31, 0.0 }
 0x5c9   : > { %863 = vadd.xlane.f32.xlu1 %v862_v32 }
 0x5ca   : > { %v1565_v33 = vpop.eup %1564 }
 0x5cb   : > { %v1567_v34 = vpop.eup %1566  ;;  %v1055_v35 = vsel %vm362_vm2, %v1565_v33, 0.0 }
 0x5cc   : > { %v859_v36 = vsel %vm362_vm2, %v1567_v34, 0.0 }
 0x5cd   : > { %1056 = vadd.xlane.f32.xlu1 %v1055_v35  ;;  %860 = vadd.xlane.f32.xlu0 %v859_v36 }
 0x5cf   : > { %v1569_v37 = vpop.eup %1568 }
 0x5d0   : > { %v1052_v38 = vsel %vm362_vm2, %v1569_v37, 0.0 }
 0x5d1   : > { %1053 = vadd.xlane.f32.xlu0 %v1052_v38 }
 0x5de   : > { %1541 = vrot.lane.b32.xlu1 %v1954_v39, %s1735_s9 }
 0x5e2   : > { %1546 = vrot.lane.b32.xlu1 %v1954_v39, %s1736_s18 }
 0x5e7   : > { %1536 = vrot.lane.b32.xlu0 %v1954_v39, %s1734_s11 }
 0x651   : > { %v669_v40 = vpop.xlane.xlu1 %668 }
 0x652   : > { %v666_v41 = vpop.xlane.xlu0 %665 }
 0x653   : > { %1570 = vrcp.f32 %v666_v41 }
 0x654   : > { %1572 = vrcp.f32 %v669_v40 }
 0x656   : > { %v864_v42 = vpop.xlane.xlu1 %863 }
 0x65a   : > { %v1057_v43 = vpop.xlane.xlu1 %1056  ;;  %v861_v44 = vpop.xlane.xlu0 %860 }
 0x65b   : > { %1574 = vrcp.f32 %v861_v44 }
 0x65c   : > { %1576 = vrcp.f32 %v864_v42 }
 0x65d   : > { %v1571_v45 = vpop.eup %1570 }
 0x65e   : > { %v1542_v46 = vpop.permute.xlu1 %1541  ;;  %v1054_v47 = vpop.xlane.xlu0 %1053  ;;  %v672_v48 = vmul.f32 %v1571_v45, %v1561_v27 }
 0x65f   : > { %1578 = vrcp.f32 %v1054_v47  ;;  %v1544_v50 = vunpack.i.h.bf16 %v1542_v46  ;;  %v1543_v51 = vunpack.i.l.bf16 %v1542_v46  ;;  %v1573_v55 = vpop.eup %1572 }
 0x660   : > { %1399 = vmatprep.mubr.msk.f32.mxu0 %vm362_vm2, %v672_v48  ;;  %1580 = vrcp.f32 %v1057_v43  ;;  %v673_v62 = vmul.f32 %v1573_v55, %v1559_v26 }
 0x661   : > { %v1442_v57 = vpack.c.bf16 %v1544_v50, %v1543_v51 }
 0x662   : > { %v1537_v49 = vpop.permute.xlu0 %1536  ;;  %v1547_v53 = vpop.permute.xlu1 %1546 }
 0x663   : > { %v1539_v39 = vunpack.i.h.bf16 %v1537_v49  ;;  %v1538_v52 = vunpack.i.l.bf16 %v1537_v49  ;;  %v1549_v58 = vunpack.i.h.bf16 %v1547_v53  ;;  %v1548_v61 = vunpack.i.l.bf16 %v1547_v53 }
 0x665   : > { %v1438_v54 = vpack.c.bf16 %v1539_v39, %v1538_v52  ;;  %v1575_v56 = vpop.eup %1574  ;;  %v1446_v2 = vpack.c.bf16 %v1549_v58, %v1548_v61 }
 0x666   : > { %v1577_v63 = vpop.eup %1576  ;;  %v867_v0 = vmul.f32 %v1575_v56, %v1567_v34 }
 0x667   : > { %1439 = vmatprep.subr.bf16.mxu0 %v1438_v54  ;;  %v868_v3 = vmul.f32 %v1577_v63, %v1563_v31 }
 0x668   : > { %1441 = vmatpush3.bf16.msra.mxu0 %v1438_v54 }
 0x669   : > { %1443 = vmatprep.subr.bf16.mxu0 %v1442_v57  ;;  %v1579_v1 = vpop.eup %1578 }
 0x66a   : > { %v1581_v4 = vpop.eup %1580  ;;  %v1060_v5 = vmul.f32 %v1579_v1, %v1569_v37 }
 0x66b   : > { %1400 = vmatmul.mubr.msk.f32.vlgmr.msra.gmra.mrb[2].mxu0 %vm362_vm2, %v673_v62  ;;  %v1061_v6 = vmul.f32 %v1581_v4, %v1565_v33 }
 0x66c   : > { %1445 = vmatpush3.bf16.msra.mxu0 %v1442_v57  ;;  %1411 = vmatprep.mubr.msk.f32.mxu0 %vm362_vm2, %v867_v0 }
 0x66d   : > { %1447 = vmatprep.subr.bf16.mxu0 %v1446_v2 }
 0x66f   : > { %1412 = vmatmul.mubr.msk.f32.vlgmr.msra.gmra.mrb[4].mxu0 %vm362_vm2, %v868_v3 }
 0x670   : > { %1449 = vmatpush3.bf16.msra.mxu0 %v1446_v2  ;;  %1423 = vmatprep.mubr.msk.f32.mxu0 %vm362_vm2, %v1060_v5 }
 0x673   : > { %1424 = vmatmul.mubr.msk.f32.vlgmr.msra.gmra.mrb[6].mxu0 %vm362_vm2, %v1061_v6 }
 0x73e   : > { %v1401_v7 = vpop.f32.mrb[2].mxu0 }
 0x73f   : > { %1153 = vrot.lane.b32.xlu0 %v1401_v7, %s1737_s25  ;;  %v754_v8 = vpop.f32.mrb[3].mxu0 }
 0x740   : > { %1151 = vrot.lane.b32.xlu1 %v754_v8, %s1737_s25 }
 0x742   : > { %v1413_v9 = vpop.f32.mrb[4].mxu0 }
 0x743   : > { %1161 = vrot.lane.b32.xlu0 %v1413_v9, %s1738_s8  ;;  %v947_v10 = vpop.f32.mrb[5].mxu0 }
 0x744   : > { %1159 = vrot.lane.b32.xlu1 %v947_v10, %s1738_s8 }
 0x746   : > { %v1425_v11 = vpop.f32.mrb[6].mxu0 }
 0x747   : > { %1169 = vrot.lane.b32.xlu0 %v1425_v11, %s1739_s26  ;;  %v1140_v12 = vpop.f32.mrb[7].mxu0 }
 0x748   : > { %1167 = vrot.lane.b32.xlu1 %v1140_v12, %s1739_s26 }
 0x7b1   : > { %v1154_v13 = vpop.permute.xlu0 %1153 }
 0x7b2   : > { %v1152_v14 = vpop.permute.xlu1 %1151  ;;  %v1174_v17 = vsel %vm382_vm1, %v1969_v59, %v1154_v13 }
 0x7b3   : > { %v1173_v18 = vsel %vm382_vm1, %v1971_v60, %v1152_v14 }
 0x7b5   : > { %v1162_v15 = vpop.permute.xlu0 %1161 }
 0x7b6   : > { %v1160_v16 = vpop.permute.xlu1 %1159  ;;  %v1176_v19 = vsel %vm362_vm2, %v1174_v17, %v1162_v15 }
 0x7b7   : > { %v1175_v21 = vsel %vm362_vm2, %v1173_v18, %v1160_v16 }
 0x7b9   : > { %v1170_v20 = vpop.permute.xlu0 %1169 }
 0x7ba   : > { %v1179_v22 = vsel %vm1177_vm3, %v1176_v19, %v1170_v20  ;;  %v1168_v23 = vpop.permute.xlu1 %1167 }
 0x7bb   : > { %1182 = vst.msk [vmem:[%s217_s21 + $0x8] sm:$0xff] %vm236_vm0, %v1179_v22  ;;  %v1178_v59 = vsel %vm1177_vm3, %v1175_v21, %v1168_v23 }
 0x7bc   : > { %1181 = vst.msk [vmem:[%s217_s21] sm:$0xff] %vm236_vm0, %v1178_v59 }
 0x7bd   : > { %1653 = shalt.err (!%p1650_p5)
}
 0x7be   : > { %s1654_s11 = scalar_lea.hbm %s2013_s7, 256  ;;  %s1658_s8 = scalar_lea.hbm %s2068_s3, 512 }
 0x7bf   : > { %p1655_p9 = scmp.ne.s32.totalorder %s2013_s7, %s1654_s11  ;;  %p1659_p3 = scmp.lt.u32.totalorder %s2013_s7, %s2068_s3 }
 0x7c0   : > { %p1660_p7 = scmp.lt.u32.totalorder %s1658_s8, %s1654_s11  ;;  %p1662_p4 = scmp.lt.u32.totalorder %s1654_s11, %s2013_s7 }
 0x7c1   : > { %p1656_p1 = pnand %p1655_p9, %p1861_p10 }
 0x7c2   : > { %p1661_p13 = por %p1660_p7, %p1659_p3 }
 0x7c3   : > { %p1657_p2 = pneg %p1656_p1 }
 0x7c4   : > { %p1663_p6 = por %p1662_p4, %p1661_p13 }
 0x7c6   : > { %p1664_p8 = pnand %p1663_p6, %p1657_p2 }
 0x7c8   : > { %1667 = shalt.err (!%p1664_p8)
}
 0x7c9   : > { %s1741_s6 = smov 128  }
 0x7ca   : > { %1456 = dma.vmem_to_hbm [thread:$0]  (%p1861_p10), %s2007_s4, 256, %s2013_s7, %s1184_s19, %s1741_s6, %s1741_s6, %s1737_s25  }
 0x7cb PF: > { %s1214_s15 = sand.u32 1, %s1706_s12   ;;  %p2086_p12 = scmp.ne.s32.totalorder %s2076_s23, 0 }
 0x7cc   : > { %p2087_p11 = scmp.ge.s32.totalorder %s1726_s17, 2  ;;  %s1215_s29 = scalar_lea.sflag [#allocation7], %s1214_s15 }
 0x7ce   : > { %p1467_p0 = pnand %p2087_p11, %p2086_p12 }
 0x7d0   : > { %1701 = dma.done.wait (!%p1467_p0), %s1215_s29, 256  }
 0x7d1   : > { %1703 = vsyncadd (!%p1467_p0), %s1215_s29, 4294967040  ;;  %s20_s17 = sadd.s32 1, %s1726_s17   ;;  %s2088_s12 = smov %s1710_s13 }
 0x7d2   : > { %p17_p5 = scmp.ge.s32.totalorder %s20_s17, 4   ;;  %s2089_s13 = smov %s1714_s14 }
 0x7d3   : > { %s2090_s14 = smov %s1870_s5  ;;  %s2091_s15 = smov %s1722_s16 }
 0x7d4   : > { %s2092_s16 = smov %s2094_s28  ;;  %19 = sbr.rel (!%p17_p5) target bundleno = 7 (0x7), region = 86 }
 0x7db   :  { %1220 = vsyncpa [#allocation6], 1 }
 0x7dc   :  { %1222 = vsyncpa [#allocation6 + $0x1], 1 }
 0x7dd   :  { %1223 = vsyncpa [#allocation9], 1 }
 0x7de   :  { %1224 = vsyncpa [#allocation7], 1 }
 0x7df   :  { %1226 = vsyncpa [#allocation7 + $0x1], 1 }

</bundles_post_ra>
